<compile_context>
chip_gen: v5e
topology: v5e:2x2
jax: 0.10.0
libtpu: 0.0.40
codegen_flags: <defaults>
</compile_context>

<pallas_src>
import functools

import jax
import jax.numpy as jnp
from jax.experimental import pallas as pl
from jax.experimental.pallas import tpu as pltpu

LANE = 128      # TPU vreg lane width
SUBLANE = 8     # TPU vreg sublane width


def _round_up(n, m):
    return ((n + m - 1) // m) * m


# ----------------------------- Pallas kernel ---------------------------------
def mlp_kernel(x_ref, w1_ref, b1_ref, w2_ref, b2_ref, o_ref):
    # Layer 1 on the MXU: bf16 operands, f32 accumulation.
    h = jnp.dot(x_ref[...], w1_ref[...], preferred_element_type=jnp.float32)
    # Bias + ReLU epilogue in f32 on the VPU; zero-padded hidden lanes stay exactly 0.
    h = jnp.maximum(h + b1_ref[...], 0.0)
    # Layer 2 on the MXU: cast activations to bf16 only at the dot input.
    y = jnp.dot(h.astype(jnp.bfloat16), w2_ref[...],
                preferred_element_type=jnp.float32)
    # Compact (tb, D_out) store: logical-size HBM writeback (no lane padding).
    o_ref[...] = (y + b2_ref[...]).astype(o_ref.dtype)


# ----------------------- one-time parameter layout glue -----------------------
def prepare_params(w1, b1, w2, b2):
    """Hoisted out of the forward pass: pad hidden dim to 128 lanes, pre-transpose
    to (in, out), cast matmul operands to bf16.  Call once and cache the result."""
    H, D_in = w1.shape
    D_out, _ = w2.shape
    H_pad = _round_up(H, LANE)   # 64 -> 128 (lane-dense hidden intermediate)

    w1_p = jnp.zeros((D_in, H_pad), jnp.bfloat16).at[:, :H].set(w1.T.astype(jnp.bfloat16))
    b1_p = jnp.zeros((1, H_pad), jnp.float32).at[0, :H].set(b1.astype(jnp.float32))
    w2_p = jnp.zeros((H_pad, D_out), jnp.bfloat16).at[:H, :].set(w2.T.astype(jnp.bfloat16))
    b2_p = b2.astype(jnp.float32).reshape(1, D_out)
    return w1_p, b1_p, w2_p, b2_p


# --------------------------------- forward ------------------------------------
@functools.partial(jax.jit, static_argnames=("batch_tile",))
def mlp_forward(x, w1_p, b1_p, w2_p, b2_p, *, batch_tile=2048):
    """Fused Linear(D_in->H) -> ReLU -> Linear(H->D_out).  Params must come from
    prepare_params().  Returns (B, D_out) float32."""
    B, D_in = x.shape
    _, H_pad = w1_p.shape
    _, D_out = w2_p.shape

    # Pad batch only to sublane granularity (8), never up to a multiple of tb.
    B_pad = _round_up(B, SUBLANE)

    # Large batch tiles amortize the ~0.35 us/step overhead; VMEM use is tiny
    # (tb=2048: x tile ~128 KB bf16 + out tile ~128 KB f32, double-buffered,
    #  weights ~12 KB resident) -- far under every generation's VMEM.
    tb = min(batch_tile, B_pad)
    # v7x has 2 TensorCores: for big batches make the "parallel" axis span >=2 steps.
    if B_pad // tb < 2 and B_pad >= 1024:
        tb = _round_up(pl.cdiv(B_pad, 2), SUBLANE)
    grid = (pl.cdiv(B_pad, tb),)   # last block may be partial; Pallas clamps the DMAs

    x_b = x.astype(jnp.bfloat16)
    if B_pad != B:
        x_b = jnp.zeros((B_pad, D_in), jnp.bfloat16).at[:B, :].set(x_b)

    flops = 2 * B_pad * (D_in * H_pad + H_pad * D_out)
    bytes_accessed = (B_pad * D_in * 2            # x (bf16)
                      + B_pad * D_out * 4         # out (f32)
                      + w1_p.size * 2 + w2_p.size * 2
                      + b1_p.size * 4 + b2_p.size * 4)

    out = pl.pallas_call(
        mlp_kernel,
        out_shape=jax.ShapeDtypeStruct((B_pad, D_out), jnp.float32),
        grid_spec=pltpu.PrefetchScalarGridSpec(
            num_scalar_prefetch=0,
            grid=grid,
            in_specs=[
                pl.BlockSpec((tb, D_in), lambda i: (i, 0)),        # x: batch-tiled
                pl.BlockSpec((D_in, H_pad), lambda i: (0, 0)),     # w1: VMEM-resident
                pl.BlockSpec((1, H_pad), lambda i: (0, 0)),        # b1: VMEM-resident
                pl.BlockSpec((H_pad, D_out), lambda i: (0, 0)),    # w2: VMEM-resident
                pl.BlockSpec((1, D_out), lambda i: (0, 0)),        # b2: VMEM-resident
            ],
            out_specs=pl.BlockSpec((tb, D_out), lambda i: (i, 0)),
        ),
        compiler_params=pltpu.CompilerParams(
            dimension_semantics=("parallel",),
        ),
        cost_estimate=pl.CostEstimate(
            flops=flops, transcendentals=0, bytes_accessed=bytes_accessed),
    )(x_b, w1_p, b1_p, w2_p, b2_p)

    # Drop only the (<=7) sublane-padding rows; columns are already compact.
    return out[:B, :]


# ------------------------- parameter initialization --------------------------
def xavier_uniform(key, out_features, in_features, dtype=jnp.float32):
    """nn.init.xavier_uniform_ on a PyTorch Linear weight of shape (out, in)."""
    bound = (6.0 / (in_features + out_features)) ** 0.5
    return jax.random.uniform(key, (out_features, in_features),
                              minval=-bound, maxval=bound, dtype=dtype)


def linear_bias(key, out_features, in_features, dtype=jnp.float32):
    """PyTorch nn.Linear default bias init: U(-1/sqrt(fan_in), 1/sqrt(fan_in)).
    (init_weights only re-initializes .weight; biases keep the default init.)"""
    bound = 1.0 / (in_features ** 0.5)
    return jax.random.uniform(key, (out_features,),
                              minval=-bound, maxval=bound, dtype=dtype)


# ----------------------------------- main -------------------------------------
if __name__ == "__main__":
    # net = Sequential(Linear(32, 64), ReLU(), Linear(64, 16))
    B, D_IN, H, D_OUT = 8, 32, 64, 16

    key = jax.random.PRNGKey(0)
    k_x, k_w1, k_b1, k_w2, k_b2 = jax.random.split(key, 5)

    x = jax.random.normal(k_x, (B, D_IN), dtype=jnp.float32)

    # PyTorch-convention weights (out, in), Xavier-uniform as in init_weights.
    w1 = xavier_uniform(k_w1, H, D_IN)    # (64, 32)
    w2 = xavier_uniform(k_w2, D_OUT, H)   # (16, 64)
    b1 = linear_bias(k_b1, H, D_IN)       # (64,)
    b2 = linear_bias(k_b2, D_OUT, H)      # (16,)

    # One-time layout glue (hoisted out of the forward pass).
    params = prepare_params(w1, b1, w2, b2)
    params = jax.block_until_ready(params)

    y = mlp_forward(x, *params)
    y = jax.block_until_ready(y)

    # Reference in plain JAX with the same bf16-rounded matmul operands (so the
    # only difference from the kernel is f32 accumulation order) -> tight check.
    # TODO(synk): kernel matches PyTorch f32 forward only to bf16 precision (~1e-2 rel).
    xb = x.astype(jnp.bfloat16).astype(jnp.float32)
    w1b = w1.astype(jnp.bfloat16).astype(jnp.float32)
    w2b = w2.astype(jnp.bfloat16).astype(jnp.float32)
    h_ref = jnp.maximum(xb @ w1b.T + b1, 0.0)
    y_ref = h_ref.astype(jnp.bfloat16).astype(jnp.float32) @ w2b.T + b2

    assert y.shape == (B, D_OUT)
    assert jnp.allclose(y, y_ref, atol=1e-3, rtol=1e-3)

    print("KERNEL_OK")
</pallas_src>

<mosaic_0001>
module attributes {stable_mosaic.version = 11 : i64} {
  func.func @mlp_kernel(%arg0: i32, %arg1: memref<8x32xbf16, #tpu.memory_space<vmem>>, %arg2: memref<32x128xbf16, #tpu.memory_space<vmem>>, %arg3: memref<1x128xf32, #tpu.memory_space<vmem>>, %arg4: memref<128x16xbf16, #tpu.memory_space<vmem>>, %arg5: memref<1x16xf32, #tpu.memory_space<vmem>>, %arg6: memref<8x16xf32, #tpu.memory_space<vmem>>) attributes {dimension_semantics = [#tpu.dimension_semantics<parallel>], iteration_bounds = array<i64: 1>, scalar_prefetch = 0 : i64, scratch_operands = 0 : i64, tpu.core_type = #tpu.core_type<tc>, window_params = [{transform_indices = @transform_0, window_bounds = array<i64: 8, 32>}, {pipeline_mode = #tpu.pipeline_mode<synchronous>, transform_indices = @transform_1, window_bounds = array<i64: 32, 128>}, {pipeline_mode = #tpu.pipeline_mode<synchronous>, transform_indices = @transform_2, window_bounds = array<i64: 1, 128>}, {pipeline_mode = #tpu.pipeline_mode<synchronous>, transform_indices = @transform_3, window_bounds = array<i64: 128, 16>}, {pipeline_mode = #tpu.pipeline_mode<synchronous>, transform_indices = @transform_4, window_bounds = array<i64: 1, 16>}, {transform_indices = @transform_5, window_bounds = array<i64: 8, 16>}]} {
    %c0 = arith.constant 0 : index
    %c0_0 = arith.constant 0 : index
    %0 = vector.load %arg1[%c0, %c0_0] : memref<8x32xbf16, #tpu.memory_space<vmem>>, vector<8x32xbf16>
    %c0_1 = arith.constant 0 : index
    %c0_2 = arith.constant 0 : index
    %1 = vector.load %arg2[%c0_1, %c0_2] : memref<32x128xbf16, #tpu.memory_space<vmem>>, vector<32x128xbf16>
    %cst = arith.constant dense<0.000000e+00> : vector<8x128xf32>
    %2 = tpu.matmul %0, %1, %cst {dimension_numbers = #tpu.dot_dimension_numbers<[1], [0], [0], [1], [0, 0, 1, 1], [], []>} : vector<8x32xbf16>, vector<32x128xbf16>, vector<8x128xf32> -> vector<8x128xf32>
    %c0_3 = arith.constant 0 : index
    %c0_4 = arith.constant 0 : index
    %3 = vector.load %arg3[%c0_3, %c0_4] : memref<1x128xf32, #tpu.memory_space<vmem>>, vector<1x128xf32>
    %4 = vector.broadcast %3 : vector<1x128xf32> to vector<8x128xf32>
    %5 = arith.addf %2, %4 : vector<8x128xf32>
    %cst_5 = arith.constant 0.000000e+00 : f32
    %6 = vector.broadcast %cst_5 : f32 to vector<8x128xf32>
    %7 = arith.maximumf %5, %6 : vector<8x128xf32>
    %8 = arith.truncf %7 : vector<8x128xf32> to vector<8x128xbf16>
    %c0_6 = arith.constant 0 : index
    %c0_7 = arith.constant 0 : index
    %9 = vector.load %arg4[%c0_6, %c0_7] : memref<128x16xbf16, #tpu.memory_space<vmem>>, vector<128x16xbf16>
    %cst_8 = arith.constant dense<0.000000e+00> : vector<8x16xf32>
    %10 = tpu.matmul %8, %9, %cst_8 {dimension_numbers = #tpu.dot_dimension_numbers<[1], [0], [0], [1], [0, 0, 1, 1], [], []>} : vector<8x128xbf16>, vector<128x16xbf16>, vector<8x16xf32> -> vector<8x16xf32>
    %c0_9 = arith.constant 0 : index
    %c0_10 = arith.constant 0 : index
    %11 = vector.load %arg5[%c0_9, %c0_10] : memref<1x16xf32, #tpu.memory_space<vmem>>, vector<1x16xf32>
    %12 = vector.broadcast %11 : vector<1x16xf32> to vector<8x16xf32>
    %13 = arith.addf %10, %12 : vector<8x16xf32>
    %c0_11 = arith.constant 0 : index
    %c0_12 = arith.constant 0 : index
    %14 = vector.load %arg6[%c0_11, %c0_12] : memref<8x16xf32, #tpu.memory_space<vmem>>, vector<8x16xf32>
    tpu.vector_store %arg6[%c0_11, %c0_12], %13 {strides = array<i32>} : memref<8x16xf32, #tpu.memory_space<vmem>>, vector<8x16xf32>,
    return
  }
  func.func @transform_0(%arg0: i32) -> (i32, i32) {
    %c0_i32 = arith.constant 0 : i32
    %c0_i32_0 = arith.constant 0 : i32
    return %arg0, %c0_i32 : i32, i32
  }
  func.func @transform_1(%arg0: i32) -> (i32, i32) {
    %c0_i32 = arith.constant 0 : i32
    %c0_i32_0 = arith.constant 0 : i32
    %c0_i32_1 = arith.constant 0 : i32
    return %c0_i32, %c0_i32_0 : i32, i32
  }
  func.func @transform_2(%arg0: i32) -> (i32, i32) {
    %c0_i32 = arith.constant 0 : i32
    %c0_i32_0 = arith.constant 0 : i32
    %c0_i32_1 = arith.constant 0 : i32
    return %c0_i32, %c0_i32_0 : i32, i32
  }
  func.func @transform_3(%arg0: i32) -> (i32, i32) {
    %c0_i32 = arith.constant 0 : i32
    %c0_i32_0 = arith.constant 0 : i32
    %c0_i32_1 = arith.constant 0 : i32
    return %c0_i32, %c0_i32_0 : i32, i32
  }
  func.func @transform_4(%arg0: i32) -> (i32, i32) {
    %c0_i32 = arith.constant 0 : i32
    %c0_i32_0 = arith.constant 0 : i32
    %c0_i32_1 = arith.constant 0 : i32
    return %c0_i32, %c0_i32_0 : i32, i32
  }
  func.func @transform_5(%arg0: i32) -> (i32, i32) {
    %c0_i32 = arith.constant 0 : i32
    %c0_i32_0 = arith.constant 0 : i32
    return %arg0, %c0_i32 : i32, i32
  }
}

</mosaic_0001>

<bundles_post_ra>
// kernel: mlp_forward.1
= control target key start
LH: loop header
LB: loop body
LE: loop exit
PB: predicated region body
PF: predicated region fallthrough
CT: control target
= control target key end

     0   :  { %s314_s0 = inlined_call_operand.vmem [shape: bf16[8,32], index: 0, kind: input, shape index: {}]   ;;  %s315_s1 = inlined_call_operand.vmem [shape: bf16[32,128], index: 1, kind: input, shape index: {}]   ;;  %s316_s2 = inlined_call_operand.vmem [shape: f32[1,128], index: 2, kind: input, shape index: {}]   ;;  %s317_s3 = inlined_call_operand.vmem [shape: bf16[128,16], index: 3, kind: input, shape index: {}]   ;;  %s318_s4 = inlined_call_operand.vmem [shape: f32[1,16], index: 4, kind: input, shape index: {}]   ;;  %s319_s5 = inlined_call_operand.hbm [shape: f32[8,16], index: 5, kind: output, shape index: {}]  }
   0x1   :  { %v203_v0 = vld [vmem:[%s315_s1 + $0x8] sm:$0xff]  ;;  %v211_v1 = vld [vmem:[%s317_s3 + $0x38] sm:$0xff]  ;;  %v202_v2 = vld [vmem:[%s315_s1] sm:$0xff] }
   0x2   :  { %53 = vmatpush.bf16.msra.mxu0 %v203_v0  ;;  %130 = vmatpush.bf16.msra.mxu1 %v211_v1  ;;  %v210_v3 = vld [vmem:[%s317_s3 + $0x30] sm:$0xff] }
   0x3   :  { %10 = vsyncpa [#allocation3], 0  ;;  %v22_v4 = vld [vmem:[%s314_s0] sm:$0xf]  ;;  %vm43_vm0 = vcmask 261120   ;;  %v209_v5 = vld [vmem:[%s317_s3 + $0x28] sm:$0xff] }
   0x4   :  { %v208_v6 = vld [vmem:[%s317_s3 + $0x20] sm:$0xff]  ;;  %v207_v7 = vld [vmem:[%s317_s3 + $0x18] sm:$0xff]  ;;  %v206_v8 = vld [vmem:[%s317_s3 + $0x10] sm:$0xff]  ;;  %s241_s17 = smov [#allocation2]   ;;  %vm143_vm1 = vcmask 130048  }
   0x5   :  { %v205_v9 = vld [vmem:[%s317_s3 + $0x8] sm:$0xff]  ;;  %v204_v10 = vld [vmem:[%s317_s3] sm:$0xff]  ;;  %s150_s18 = sshll.u32 %s241_s17, 4  ;;  %s152_s3 = sshll.u32 %s319_s5, 4  ;;  %s151_s18 = int_to_ptr.vmem [resolvable:$true] %s150_s18  ;;  %s153_s3 = int_to_ptr.hbm [resolvable:$true] %s152_s3 }
   0x6   :  { %54 = vmatpush.bf16.msra.mxu0 %v202_v2  ;;  %131 = vmatpush.bf16.msra.mxu1 %v210_v3  ;;  %v213_v11 = vld [vmem:[%s316_s2] ss:$0 sm:$0xff] }
   0x7   :  { %v214_v17 = vld [vmem:[%s318_s4] ss:$0 sm:$0xff] }
   0x9   :  { %169 = vmatmul.msk.bf16.vlgmr.msra.gmra.mxu0 %vm43_vm0, %v22_v4 }
   0xa   :  { %132 = vmatpush.bf16.msra.mxu1 %v209_v5 }
   0xe   :  { %133 = vmatpush.bf16.msra.mxu1 %v208_v6 }
  0x12   :  { %134 = vmatpush.bf16.msra.mxu1 %v207_v7 }
  0x16   :  { %135 = vmatpush.bf16.msra.mxu1 %v206_v8 }
  0x1a   :  { %136 = vmatpush.bf16.msra.mxu1 %v205_v9 }
  0x1e   :  { %137 = vmatpush.bf16.msra.mxu1 %v204_v10 }
  0x86   :  { %v56_v12 = vpop.f32.mrf.mxu0 }
  0x87   :  { %v57_v13 = vadd.f32 %v213_v11, %v56_v12 }
  0x89   :  { %v60_v14 = vmax.f32 %v57_v13, 0.0 }
  0x8b   :  { %v61_v15 = vpack.c.bf16 %v60_v14, %v60_v14 }
  0x8d   :  { %138 = vmatmul.bf16.vlgmr.msra.gmra.mxu1 %v61_v15 }
  0x8e   :  { %v58_v16 = vpop.f32.mrf.mxu0 }
 0x10a   :  { %v139_v18 = vpop.f32.mrf.mxu1 }
 0x10b   :  { %v140_v19 = vadd.f32 %v214_v17, %v139_v18 }
 0x10d   :  { %144 = vst.msk [vmem:[#allocation2] sm:$0xff] %vm143_vm1, %v140_v19 }
 0x10e   :  { %155 = dma.vmem_to_hbm [thread:$0]  %s151_s18, 128, %s153_s3, [#allocation3]  }
 0x112   :  { %v141_v20 = vpop.f32.mrf.mxu1 }
 0x113   :  { %239 = dma.done.wait [#allocation3], 128  }
 0x114   :  { %240 = vsyncadd [#allocation3], 4294967168 }
 0x115   :  { %160 = vsyncpa [#allocation3], 1 }

</bundles_post_ra>
